<compile_context>
chip_gen: v6e
topology: v6e:2x2x1
jax: 0.10.0
libtpu: 0.0.40
codegen_flags: <defaults>
</compile_context>

<pallas_src>
import functools

import jax
import jax.numpy as jnp
from jax.experimental import pallas as pl
from jax.experimental.pallas import tpu as pltpu


def _round_up(x, m):
    return ((x + m - 1) // m) * m


# --------------------------------------------------------------------------
# Pallas kernel: focal + smooth-L1 partial sums over lane-dense anchor tiles.
# Inputs are channel-major: conf (C, N), ploc/gloc (4, N), labels_bin (1, N).
# Output: per-shard partial sums [num_pos, sl1_sum, cls_sum, bin_sum] packed
# into lanes 0..3 of a (1, 8, 128) block.
# --------------------------------------------------------------------------
def _focal_loss_kernel(conf_ref, ploc_ref, gloc_ref, lbin_ref, out_ref,
                       sl1_acc, foc_acc, pos_acc, *, alpha, gamma):
    i = pl.program_id(1)

    @pl.when(i == 0)
    def _init():
        sl1_acc[...] = jnp.zeros_like(sl1_acc)
        foc_acc[...] = jnp.zeros_like(foc_acc)
        pos_acc[...] = jnp.zeros_like(pos_acc)

    lbin = lbin_ref[...]                                    # (1, T) int32
    posf = (lbin > 0).astype(jnp.float32)                   # positive anchors
    validf = (lbin > -1).astype(jnp.float32)                # non-ignored
    pos_acc[...] += posf

    # ---- smooth-L1 over positive anchors (beta = 1/9), vector accumulate
    diff = jnp.abs(ploc_ref[...].astype(jnp.float32)
                   - gloc_ref[...].astype(jnp.float32))     # (4, T)
    beta = 1.0 / 9.0
    sl1 = jnp.where(diff < beta, (0.5 / beta) * diff * diff, diff - 0.5 * beta)
    sl1_acc[...] += sl1 * posf                              # broadcast (1,T)

    # ---- sigmoid focal loss straight from logits (stable, fewer EUP ops)
    x = conf_ref[...].astype(jnp.float32)                   # (C, T) logits
    ch = jax.lax.broadcasted_iota(jnp.int32, x.shape, 0)    # channel index
    # channel 0: binary objectness label; channels c>=1: one-hot (lbin == c)
    y = jnp.where(ch == 0, posf, (ch == lbin).astype(jnp.float32))

    t = jnp.exp(-jnp.abs(x))                                # EUP exp
    one_plus_t = 1.0 + t
    # BCE with logits: max(x,0) - x*y + log(1 + exp(-|x|))
    bce = jnp.maximum(x, 0.0) - x * y + jnp.log(one_plus_t)  # EUP log
    inv = pl.reciprocal(one_plus_t, approx=True)             # EUP rcp (cheap)
    p = jnp.where(x >= 0, inv, t * inv)                      # sigmoid(x)

    alpha_factor = alpha * y + (1.0 - alpha) * (1.0 - y)
    one_m_pt = 1.0 - (p * y + (1.0 - p) * (1.0 - y))
    if gamma == 2.0:                 # module hard-codes gamma = 2.0
        pw = one_m_pt * one_m_pt
    else:
        pw = jnp.power(one_m_pt, jnp.float32(gamma))
    foc_acc[...] += bce * alpha_factor * pw * validf         # (C, T) VPU add

    @pl.when(i == pl.num_programs(1) - 1)
    def _finalize():
        pos_sum = jnp.sum(pos_acc[...])
        sl1_sum = jnp.sum(sl1_acc[...])
        bin_sum = jnp.sum(foc_acc[0:1, :])                   # channel 0
        cls_sum = jnp.sum(foc_acc[...]) - bin_sum            # channels 1..NC
        lane = jax.lax.broadcasted_iota(jnp.int32, out_ref.shape, 2)
        out_ref[...] = (jnp.where(lane == 0, pos_sum, 0.0)
                        + jnp.where(lane == 1, sl1_sum, 0.0)
                        + jnp.where(lane == 2, cls_sum, 0.0)
                        + jnp.where(lane == 3, bin_sum, 0.0))


def _focal_loss_pallas(conf_t, ploc_t, gloc_t, lbin, alpha, gamma,
                       num_shards=2, tile_n=8192):
    """conf_t: (C, N) logits; ploc_t/gloc_t: (4, N); lbin: (1, N) int32."""
    C, N = conf_t.shape

    per_shard = _round_up(max(-(-N // num_shards), 128), 128)
    tile = min(tile_n, per_shard)
    n_pad = _round_up(N, num_shards * tile)
    pad = n_pad - N
    if pad:
        conf_t = jnp.pad(conf_t, ((0, 0), (0, pad)))
        ploc_t = jnp.pad(ploc_t, ((0, 0), (0, pad)))
        gloc_t = jnp.pad(gloc_t, ((0, 0), (0, pad)))
        lbin = jnp.pad(lbin, ((0, 0), (0, pad)), constant_values=-1)  # ignored
    steps = n_pad // (num_shards * tile)

    kernel = functools.partial(_focal_loss_kernel,
                               alpha=float(alpha), gamma=float(gamma))
    amap = lambda s, i: (0, s * steps + i)

    out = pl.pallas_call(
        kernel,
        out_shape=jax.ShapeDtypeStruct((num_shards, 8, 128), jnp.float32),
        grid_spec=pltpu.PrefetchScalarGridSpec(
            num_scalar_prefetch=0,
            grid=(num_shards, steps),
            in_specs=[
                pl.BlockSpec((C, tile), amap),      # logits, channel-major
                pl.BlockSpec((4, tile), amap),      # predicted locations
                pl.BlockSpec((4, tile), amap),      # matched gt locations
                pl.BlockSpec((1, tile), amap),      # int32 match labels
            ],
            out_specs=pl.BlockSpec((1, 8, 128), lambda s, i: (s, 0, 0)),
            scratch_shapes=[
                pltpu.VMEM((4, tile), jnp.float32),  # smooth-L1 accumulator
                pltpu.VMEM((C, tile), jnp.float32),  # focal accumulator
                pltpu.VMEM((1, tile), jnp.float32),  # positive-count acc
            ],
        ),
        compiler_params=pltpu.CompilerParams(
            dimension_semantics=("parallel", "arbitrary")),
    )(conf_t, ploc_t, gloc_t, lbin)

    # Combine per-shard partial sums and normalise (matches the module).
    partial = jnp.sum(out[:, 0, :], axis=0)          # lanes 0..3 hold the sums
    num_pos = jnp.maximum(1.0, partial[0])
    localisation_loss = partial[1] / (num_pos * 4.0)
    classification_loss = partial[2] / num_pos
    binary_loss = partial[3] / num_pos
    return localisation_loss, classification_loss, binary_loss


# --------------------------------------------------------------------------
# Plain-JAX glue: IoU-based anchor matching (stand-in for
# box_utils.match_anchors_wIgnore, which is not provided).
# --------------------------------------------------------------------------
def _box_iou(a, b):
    area_a = (a[:, 2] - a[:, 0]) * (a[:, 3] - a[:, 1])
    area_b = (b[:, 2] - b[:, 0]) * (b[:, 3] - b[:, 1])
    lt = jnp.maximum(a[:, None, :2], b[None, :, :2])
    rb = jnp.minimum(a[:, None, 2:], b[None, :, 2:])
    wh = jnp.clip(rb - lt, 0.0)
    inter = wh[..., 0] * wh[..., 1]
    union = area_a[:, None] + area_b[None, :] - inter
    return inter / jnp.maximum(union, 1e-8)


def focal_loss_forward(confidence, predicted_locations, gts, counts, anchors,
                       positive_threshold=0.5, negative_threshold=0.4,
                       alpha=0.25, gamma=2.0, include_bin_loss=False):
    """Mirrors FocalLoss.forward (include_phase=False path).

    confidence: (B, A, 1 + num_classes) raw logits (sigmoid applied in-kernel).
    predicted_locations: (B, A, 4); gts: (B, Gmax, 5); counts: (B,);
    anchors: (A, 4) xyxy.
    """
    B, A, C = confidence.shape
    gmax = gts.shape[1]

    def match_one(gt, cnt):
        boxes = gt[:, :4]
        lbls = gt[:, 4].astype(jnp.int32)
        ious = _box_iou(anchors, boxes)                      # (A, Gmax)
        valid = jnp.arange(gmax) < cnt
        ious = jnp.where(valid[None, :], ious, -1.0)
        best_iou = ious.max(axis=1)
        best_gt = ious.argmax(axis=1)
        conf = jnp.where(best_iou >= positive_threshold, lbls[best_gt],
                         jnp.where(best_iou < negative_threshold, 0, -1))
        # TODO(synk): original encodes box-regression targets via box_utils;
        # exact encoding unknown, use matched gt box coordinates directly.
        loc = boxes[best_gt]
        return conf.astype(jnp.int32), loc

    labels_bin, gt_locations = jax.vmap(match_one)(gts, counts)  # (B,A),(B,A,4)

    # Channel-major, lane-dense layout for the kernel: anchors on lanes.
    # (One-hot class labels are built inside the kernel from labels_bin.)
    N = B * A
    conf_t = confidence.reshape(N, C).T                       # (C, N)
    ploc_t = predicted_locations.reshape(N, 4).T              # (4, N)
    gloc_t = gt_locations.reshape(N, 4).T                     # (4, N)
    lbin = labels_bin.reshape(1, N).astype(jnp.int32)         # (1, N)
    # NOTE: conf_t/ploc_t/gloc_t could be streamed as bfloat16 to halve DMA
    # traffic; kept f32 here to preserve the module's numerics exactly.

    localisation_loss, classification_loss, binary_loss = _focal_loss_pallas(
        conf_t, ploc_t, gloc_t, lbin, alpha, gamma)

    cls = ((classification_loss + binary_loss) / 2.0
           if include_bin_loss else classification_loss)
    # TODO(synk): include_phase=True cross-entropy phase loss not implemented.
    return localisation_loss, cls, None


# --------------------------------------------------------------------------
if __name__ == "__main__":
    key = jax.random.PRNGKey(0)
    B, A, num_classes = 2, 256, 4
    C = num_classes + 1

    k1, k2 = jax.random.split(key)
    confidence = jax.random.normal(k1, (B, A, C), dtype=jnp.float32)
    predicted_locations = jax.random.normal(k2, (B, A, 4), dtype=jnp.float32) * 0.1

    # 16x16 grid of anchors (xyxy in [0, 1])
    g = 16
    centers = (jnp.arange(g) + 0.5) / g
    ccx, ccy = jnp.meshgrid(centers, centers, indexing="ij")
    ccx, ccy = ccx.reshape(-1), ccy.reshape(-1)
    s = 0.06
    anchors = jnp.stack([ccx - s, ccy - s, ccx + s, ccy + s], axis=1)  # (256, 4)

    # synthetic ground truths: boxes coincide with some anchors -> positives
    b0_boxes = anchors[jnp.array([10, 100, 0])]
    b1_boxes = anchors[jnp.array([37, 150, 220])]
    labels0 = jnp.array([1.0, 3.0, 0.0], dtype=jnp.float32)
    labels1 = jnp.array([2.0, 4.0, 1.0], dtype=jnp.float32)
    gts = jnp.stack([
        jnp.concatenate([b0_boxes, labels0[:, None]], axis=1),
        jnp.concatenate([b1_boxes, labels1[:, None]], axis=1),
    ], axis=0)                                   # (B, 3, 5)
    counts = jnp.array([2, 3], dtype=jnp.int32)  # (B,)

    loc_loss, cls_loss, phase_loss = focal_loss_forward(
        confidence, predicted_locations, gts, counts, anchors,
        positive_threshold=0.5, negative_threshold=0.4,
        alpha=0.25, gamma=2.0, include_bin_loss=False)

    jax.block_until_ready((loc_loss, cls_loss))
    print("KERNEL_OK")
</pallas_src>

<mosaic_0001>
module attributes {stable_mosaic.version = 11 : i64} {
  func.func @_focal_loss_kernel(%arg0: i32, %arg1: i32, %arg2: memref<5x256xf32, #tpu.memory_space<vmem>>, %arg3: memref<4x256xf32, #tpu.memory_space<vmem>>, %arg4: memref<4x256xf32, #tpu.memory_space<vmem>>, %arg5: memref<1x256xi32, #tpu.memory_space<vmem>>, %arg6: memref<1x8x128xf32, #tpu.memory_space<vmem>>, %arg7: memref<4x256xf32, #tpu.memory_space<vmem>>, %arg8: memref<5x256xf32, #tpu.memory_space<vmem>>, %arg9: memref<1x256xf32, #tpu.memory_space<vmem>>) attributes {dimension_semantics = [#tpu.dimension_semantics<parallel>, #tpu.dimension_semantics<arbitrary>], iteration_bounds = array<i64: 2, 1>, scalar_prefetch = 0 : i64, scratch_operands = 3 : i64, tpu.core_type = #tpu.core_type<tc>, window_params = [{transform_indices = @transform_0, window_bounds = array<i64: 5, 256>}, {transform_indices = @transform_1, window_bounds = array<i64: 4, 256>}, {transform_indices = @transform_2, window_bounds = array<i64: 4, 256>}, {transform_indices = @transform_3, window_bounds = array<i64: 1, 256>}, {transform_indices = @transform_4, window_bounds = array<i64: 1, 8, 128>}]} {
    %c0_i32 = arith.constant 0 : i32
    %0 = arith.cmpi eq, %arg1, %c0_i32 : i32
    %1 = arith.extui %0 : i1 to i32
    %c0_i32_0 = arith.constant 0 : i32
    %2 = arith.cmpi ne, %1, %c0_i32_0 : i32
    scf.if %2 {
      %cst_36 = arith.constant 0.000000e+00 : f32
      %87 = vector.broadcast %cst_36 : f32 to vector<4x256xf32>
      %c0_37 = arith.constant 0 : index
      %c0_38 = arith.constant 0 : index
      %88 = vector.load %arg7[%c0_37, %c0_38] : memref<4x256xf32, #tpu.memory_space<vmem>>, vector<4x256xf32>
      tpu.vector_store %arg7[%c0_37, %c0_38], %87 {strides = array<i32>} : memref<4x256xf32, #tpu.memory_space<vmem>>, vector<4x256xf32>,
      %cst_39 = arith.constant 0.000000e+00 : f32
      %89 = vector.broadcast %cst_39 : f32 to vector<5x256xf32>
      %c0_40 = arith.constant 0 : index
      %c0_41 = arith.constant 0 : index
      %90 = vector.load %arg8[%c0_40, %c0_41] : memref<5x256xf32, #tpu.memory_space<vmem>>, vector<5x256xf32>
      tpu.vector_store %arg8[%c0_40, %c0_41], %89 {strides = array<i32>} : memref<5x256xf32, #tpu.memory_space<vmem>>, vector<5x256xf32>,
      %cst_42 = arith.constant 0.000000e+00 : f32
      %91 = vector.broadcast %cst_42 : f32 to vector<1x256xf32>
      %c0_43 = arith.constant 0 : index
      %c0_44 = arith.constant 0 : index
      %92 = vector.load %arg9[%c0_43, %c0_44] : memref<1x256xf32, #tpu.memory_space<vmem>>, vector<1x256xf32>
      tpu.vector_store %arg9[%c0_43, %c0_44], %91 {strides = array<i32>} : memref<1x256xf32, #tpu.memory_space<vmem>>, vector<1x256xf32>,
    } else {
    }
    %c0 = arith.constant 0 : index
    %c0_1 = arith.constant 0 : index
    %3 = vector.load %arg5[%c0, %c0_1] : memref<1x256xi32, #tpu.memory_space<vmem>>, vector<1x256xi32>
    %c0_i32_2 = arith.constant 0 : i32
    %4 = vector.broadcast %c0_i32_2 : i32 to vector<1x256xi32>
    %5 = arith.cmpi sgt, %3, %4 : vector<1x256xi32>
    %6 = arith.extui %5 : vector<1x256xi1> to vector<1x256xi32>
    %7 = arith.sitofp %6 : vector<1x256xi32> to vector<1x256xf32>
    %c-1_i32 = arith.constant -1 : i32
    %8 = vector.broadcast %c-1_i32 : i32 to vector<1x256xi32>
    %9 = arith.cmpi sgt, %3, %8 : vector<1x256xi32>
    %10 = arith.extui %9 : vector<1x256xi1> to vector<1x256xi32>
    %11 = arith.sitofp %10 : vector<1x256xi32> to vector<1x256xf32>
    %c0_3 = arith.constant 0 : index
    %c0_4 = arith.constant 0 : index
    %12 = vector.load %arg9[%c0_3, %c0_4] : memref<1x256xf32, #tpu.memory_space<vmem>>, vector<1x256xf32>
    %13 = arith.addf %12, %7 : vector<1x256xf32>
    %c0_5 = arith.constant 0 : index
    %c0_6 = arith.constant 0 : index
    %14 = vector.load %arg9[%c0_5, %c0_6] : memref<1x256xf32, #tpu.memory_space<vmem>>, vector<1x256xf32>
    tpu.vector_store %arg9[%c0_5, %c0_6], %13 {strides = array<i32>} : memref<1x256xf32, #tpu.memory_space<vmem>>, vector<1x256xf32>,
    %c0_7 = arith.constant 0 : index
    %c0_8 = arith.constant 0 : index
    %15 = vector.load %arg3[%c0_7, %c0_8] : memref<4x256xf32, #tpu.memory_space<vmem>>, vector<4x256xf32>
    %c0_9 = arith.constant 0 : index
    %c0_10 = arith.constant 0 : index
    %16 = vector.load %arg4[%c0_9, %c0_10] : memref<4x256xf32, #tpu.memory_space<vmem>>, vector<4x256xf32>
    %17 = arith.subf %15, %16 : vector<4x256xf32>
    %18 = math.absf %17 : vector<4x256xf32>
    %cst = arith.constant 0.111111112 : f32
    %19 = vector.broadcast %cst : f32 to vector<4x256xf32>
    %20 = arith.cmpf olt, %18, %19 : vector<4x256xf32>
    %cst_11 = arith.constant 4.500000e+00 : f32
    %21 = vector.broadcast %cst_11 : f32 to vector<4x256xf32>
    %22 = arith.mulf %21, %18 : vector<4x256xf32>
    %23 = arith.mulf %22, %18 : vector<4x256xf32>
    %cst_12 = arith.constant 0.055555556 : f32
    %24 = vector.broadcast %cst_12 : f32 to vector<4x256xf32>
    %25 = arith.subf %18, %24 : vector<4x256xf32>
    %26 = arith.select %20, %23, %25 : vector<4x256xi1>, vector<4x256xf32>
    %c0_13 = arith.constant 0 : index
    %c0_14 = arith.constant 0 : index
    %27 = vector.load %arg7[%c0_13, %c0_14] : memref<4x256xf32, #tpu.memory_space<vmem>>, vector<4x256xf32>
    %28 = vector.broadcast %7 : vector<1x256xf32> to vector<4x256xf32>
    %29 = arith.mulf %26, %28 : vector<4x256xf32>
    %30 = arith.addf %27, %29 : vector<4x256xf32>
    %c0_15 = arith.constant 0 : index
    %c0_16 = arith.constant 0 : index
    %31 = vector.load %arg7[%c0_15, %c0_16] : memref<4x256xf32, #tpu.memory_space<vmem>>, vector<4x256xf32>
    tpu.vector_store %arg7[%c0_15, %c0_16], %30 {strides = array<i32>} : memref<4x256xf32, #tpu.memory_space<vmem>>, vector<4x256xf32>,
    %c0_17 = arith.constant 0 : index
    %c0_18 = arith.constant 0 : index
    %32 = vector.load %arg2[%c0_17, %c0_18] : memref<5x256xf32, #tpu.memory_space<vmem>>, vector<5x256xf32>
    %33 = tpu.iota {dimensions = array<i32: 0>} : vector<5x256xi32>
    %c0_i32_19 = arith.constant 0 : i32
    %34 = vector.broadcast %c0_i32_19 : i32 to vector<5x256xi32>
    %35 = arith.cmpi eq, %33, %34 : vector<5x256xi32>
    %36 = vector.broadcast %3 : vector<1x256xi32> to vector<5x256xi32>
    %37 = arith.cmpi eq, %33, %36 : vector<5x256xi32>
    %38 = arith.extui %37 : vector<5x256xi1> to vector<5x256xi32>
    %39 = arith.sitofp %38 : vector<5x256xi32> to vector<5x256xf32>
    %40 = vector.shape_cast %7 : vector<1x256xf32> to vector<1x256xf32>
    %41 = vector.broadcast %40 : vector<1x256xf32> to vector<5x256xf32>
    %42 = arith.select %35, %41, %39 : vector<5x256xi1>, vector<5x256xf32>
    %43 = math.absf %32 : vector<5x256xf32>
    %cst_20 = arith.constant 0.000000e+00 : f32
    %44 = vector.broadcast %cst_20 : f32 to vector<5x256xf32>
    %45 = arith.subf %44, %43 : vector<5x256xf32>
    %46 = math.exp %45 : vector<5x256xf32>
    %cst_21 = arith.constant 1.000000e+00 : f32
    %47 = vector.broadcast %cst_21 : f32 to vector<5x256xf32>
    %48 = arith.addf %47, %46 : vector<5x256xf32>
    %cst_22 = arith.constant 0.000000e+00 : f32
    %49 = vector.broadcast %cst_22 : f32 to vector<5x256xf32>
    %50 = arith.maximumf %32, %49 : vector<5x256xf32>
    %51 = arith.mulf %32, %42 : vector<5x256xf32>
    %52 = arith.subf %50, %51 : vector<5x256xf32>
    %53 = math.log %48 : vector<5x256xf32>
    %54 = arith.addf %52, %53 : vector<5x256xf32>
    %55 = tpu.reciprocal %48 {approx = true} : vector<5x256xf32> -> vector<5x256xf32>
    %cst_23 = arith.constant 0.000000e+00 : f32
    %56 = vector.broadcast %cst_23 : f32 to vector<5x256xf32>
    %57 = arith.cmpf oge, %32, %56 : vector<5x256xf32>
    %58 = arith.mulf %46, %55 : vector<5x256xf32>
    %59 = arith.select %57, %55, %58 : vector<5x256xi1>, vector<5x256xf32>
    %cst_24 = arith.constant 2.500000e-01 : f32
    %60 = vector.broadcast %cst_24 : f32 to vector<5x256xf32>
    %61 = arith.mulf %60, %42 : vector<5x256xf32>
    %cst_25 = arith.constant 1.000000e+00 : f32
    %62 = vector.broadcast %cst_25 : f32 to vector<5x256xf32>
    %63 = arith.subf %62, %42 : vector<5x256xf32>
    %cst_26 = arith.constant 7.500000e-01 : f32
    %64 = vector.broadcast %cst_26 : f32 to vector<5x256xf32>
    %65 = arith.mulf %64, %63 : vector<5x256xf32>
    %66 = arith.addf %61, %65 : vector<5x256xf32>
    %67 = arith.mulf %59, %42 : vector<5x256xf32>
    %cst_27 = arith.constant 1.000000e+00 : f32
    %68 = vector.broadcast %cst_27 : f32 to vector<5x256xf32>
    %69 = arith.subf %68, %59 : vector<5x256xf32>
    %cst_28 = arith.constant 1.000000e+00 : f32
    %70 = vector.broadcast %cst_28 : f32 to vector<5x256xf32>
    %71 = arith.subf %70, %42 : vector<5x256xf32>
    %72 = arith.mulf %69, %71 : vector<5x256xf32>
    %73 = arith.addf %67, %72 : vector<5x256xf32>
    %cst_29 = arith.constant 1.000000e+00 : f32
    %74 = vector.broadcast %cst_29 : f32 to vector<5x256xf32>
    %75 = arith.subf %74, %73 : vector<5x256xf32>
    %76 = arith.mulf %75, %75 : vector<5x256xf32>
    %c0_30 = arith.constant 0 : index
    %c0_31 = arith.constant 0 : index
    %77 = vector.load %arg8[%c0_30, %c0_31] : memref<5x256xf32, #tpu.memory_space<vmem>>, vector<5x256xf32>
    %78 = arith.mulf %54, %66 : vector<5x256xf32>
    %79 = arith.mulf %78, %76 : vector<5x256xf32>
    %80 = vector.broadcast %11 : vector<1x256xf32> to vector<5x256xf32>
    %81 = arith.mulf %79, %80 : vector<5x256xf32>
    %82 = arith.addf %77, %81 : vector<5x256xf32>
    %c0_32 = arith.constant 0 : index
    %c0_33 = arith.constant 0 : index
    %83 = vector.load %arg8[%c0_32, %c0_33] : memref<5x256xf32, #tpu.memory_space<vmem>>, vector<5x256xf32>
    tpu.vector_store %arg8[%c0_32, %c0_33], %82 {strides = array<i32>} : memref<5x256xf32, #tpu.memory_space<vmem>>, vector<5x256xf32>,
    %c0_i32_34 = arith.constant 0 : i32
    %84 = arith.cmpi eq, %arg1, %c0_i32_34 : i32
    %85 = arith.extui %84 : i1 to i32
    %c0_i32_35 = arith.constant 0 : i32
    %86 = arith.cmpi ne, %85, %c0_i32_35 : i32
    scf.if %86 {
      %c0_36 = arith.constant 0 : index
      %c0_37 = arith.constant 0 : index
      %87 = vector.load %arg9[%c0_36, %c0_37] : memref<1x256xf32, #tpu.memory_space<vmem>>, vector<1x256xf32>
      %88 = vector.shape_cast %87 : vector<1x256xf32> to vector<1x1x256xf32>
      %cst_38 = arith.constant dense<0.000000e+00> : vector<1xf32>
      %89 = vector.multi_reduction <add>, %88, %cst_38 [1, 2] : vector<1x1x256xf32> to vector<1xf32>
      %90 = vector.shape_cast %89 : vector<1xf32> to vector<1x1x1xf32>
      %91 = vector.extract %90[0, 0, 0] : f32 from vector<1x1x1xf32>
      %c0_39 = arith.constant 0 : index
      %c0_40 = arith.constant 0 : index
      %92 = vector.load %arg7[%c0_39, %c0_40] : memref<4x256xf32, #tpu.memory_space<vmem>>, vector<4x256xf32>
      %93 = vector.shape_cast %92 : vector<4x256xf32> to vector<1x4x256xf32>
      %cst_41 = arith.constant dense<0.000000e+00> : vector<1xf32>
      %94 = vector.multi_reduction <add>, %93, %cst_41 [1, 2] : vector<1x4x256xf32> to vector<1xf32>
      %95 = vector.shape_cast %94 : vector<1xf32> to vector<1x1x1xf32>
      %96 = vector.extract %95[0, 0, 0] : f32 from vector<1x1x1xf32>
      %c0_42 = arith.constant 0 : index
      %c0_43 = arith.constant 0 : index
      %97 = vector.load %arg8[%c0_42, %c0_43] : memref<5x256xf32, #tpu.memory_space<vmem>>, vector<1x256xf32>
      %98 = vector.shape_cast %97 : vector<1x256xf32> to vector<1x1x256xf32>
      %cst_44 = arith.constant dense<0.000000e+00> : vector<1xf32>
      %99 = vector.multi_reduction <add>, %98, %cst_44 [1, 2] : vector<1x1x256xf32> to vector<1xf32>
      %100 = vector.shape_cast %99 : vector<1xf32> to vector<1x1x1xf32>
      %101 = vector.extract %100[0, 0, 0] : f32 from vector<1x1x1xf32>
      %c0_45 = arith.constant 0 : index
      %c0_46 = arith.constant 0 : index
      %102 = vector.load %arg8[%c0_45, %c0_46] : memref<5x256xf32, #tpu.memory_space<vmem>>, vector<5x256xf32>
      %103 = vector.shape_cast %102 : vector<5x256xf32> to vector<1x5x256xf32>
      %cst_47 = arith.constant dense<0.000000e+00> : vector<1xf32>
      %104 = vector.multi_reduction <add>, %103, %cst_47 [1, 2] : vector<1x5x256xf32> to vector<1xf32>
      %105 = vector.shape_cast %104 : vector<1xf32> to vector<1x1x1xf32>
      %106 = vector.extract %105[0, 0, 0] : f32 from vector<1x1x1xf32>
      %107 = arith.subf %106, %101 : f32
      %108 = tpu.iota {dimensions = array<i32: 2>} : vector<1x8x128xi32>
      %c0_i32_48 = arith.constant 0 : i32
      %109 = vector.broadcast %c0_i32_48 : i32 to vector<1x8x128xi32>
      %110 = arith.cmpi eq, %108, %109 : vector<1x8x128xi32>
      %cst_49 = arith.constant 0.000000e+00 : f32
      %111 = vector.broadcast %91 : f32 to vector<1x8x128xf32>
      %112 = vector.broadcast %cst_49 : f32 to vector<1x8x128xf32>
      %113 = arith.select %110, %111, %112 : vector<1x8x128xi1>, vector<1x8x128xf32>
      %c1_i32 = arith.constant 1 : i32
      %114 = vector.broadcast %c1_i32 : i32 to vector<1x8x128xi32>
      %115 = arith.cmpi eq, %108, %114 : vector<1x8x128xi32>
      %cst_50 = arith.constant 0.000000e+00 : f32
      %116 = vector.broadcast %96 : f32 to vector<1x8x128xf32>
      %117 = vector.broadcast %cst_50 : f32 to vector<1x8x128xf32>
      %118 = arith.select %115, %116, %117 : vector<1x8x128xi1>, vector<1x8x128xf32>
      %119 = arith.addf %113, %118 : vector<1x8x128xf32>
      %c2_i32 = arith.constant 2 : i32
      %120 = vector.broadcast %c2_i32 : i32 to vector<1x8x128xi32>
      %121 = arith.cmpi eq, %108, %120 : vector<1x8x128xi32>
      %cst_51 = arith.constant 0.000000e+00 : f32
      %122 = vector.broadcast %107 : f32 to vector<1x8x128xf32>
      %123 = vector.broadcast %cst_51 : f32 to vector<1x8x128xf32>
      %124 = arith.select %121, %122, %123 : vector<1x8x128xi1>, vector<1x8x128xf32>
      %125 = arith.addf %119, %124 : vector<1x8x128xf32>
      %c3_i32 = arith.constant 3 : i32
      %126 = vector.broadcast %c3_i32 : i32 to vector<1x8x128xi32>
      %127 = arith.cmpi eq, %108, %126 : vector<1x8x128xi32>
      %cst_52 = arith.constant 0.000000e+00 : f32
      %128 = vector.broadcast %101 : f32 to vector<1x8x128xf32>
      %129 = vector.broadcast %cst_52 : f32 to vector<1x8x128xf32>
      %130 = arith.select %127, %128, %129 : vector<1x8x128xi1>, vector<1x8x128xf32>
      %131 = arith.addf %125, %130 : vector<1x8x128xf32>
      %c0_53 = arith.constant 0 : index
      %c0_54 = arith.constant 0 : index
      %c0_55 = arith.constant 0 : index
      %132 = vector.load %arg6[%c0_53, %c0_54, %c0_55] : memref<1x8x128xf32, #tpu.memory_space<vmem>>, vector<1x8x128xf32>
      tpu.vector_store %arg6[%c0_53, %c0_54, %c0_55], %131 {strides = array<i32>} : memref<1x8x128xf32, #tpu.memory_space<vmem>>, vector<1x8x128xf32>,
    } else {
    }
    return
  }
  func.func @transform_0(%arg0: i32, %arg1: i32) -> (i32, i32) {
    %c1_i32 = arith.constant 1 : i32
    %0 = arith.muli %arg0, %c1_i32 : i32
    %1 = arith.addi %0, %arg1 : i32
    %c0_i32 = arith.constant 0 : i32
    %c0_i32_0 = arith.constant 0 : i32
    return %c0_i32, %1 : i32, i32
  }
  func.func @transform_1(%arg0: i32, %arg1: i32) -> (i32, i32) {
    %c1_i32 = arith.constant 1 : i32
    %0 = arith.muli %arg0, %c1_i32 : i32
    %1 = arith.addi %0, %arg1 : i32
    %c0_i32 = arith.constant 0 : i32
    %c0_i32_0 = arith.constant 0 : i32
    return %c0_i32, %1 : i32, i32
  }
  func.func @transform_2(%arg0: i32, %arg1: i32) -> (i32, i32) {
    %c1_i32 = arith.constant 1 : i32
    %0 = arith.muli %arg0, %c1_i32 : i32
    %1 = arith.addi %0, %arg1 : i32
    %c0_i32 = arith.constant 0 : i32
    %c0_i32_0 = arith.constant 0 : i32
    return %c0_i32, %1 : i32, i32
  }
  func.func @transform_3(%arg0: i32, %arg1: i32) -> (i32, i32) {
    %c1_i32 = arith.constant 1 : i32
    %0 = arith.muli %arg0, %c1_i32 : i32
    %1 = arith.addi %0, %arg1 : i32
    %c0_i32 = arith.constant 0 : i32
    %c0_i32_0 = arith.constant 0 : i32
    return %c0_i32, %1 : i32, i32
  }
  func.func @transform_4(%arg0: i32, %arg1: i32) -> (i32, i32, i32) {
    %c0_i32 = arith.constant 0 : i32
    %c0_i32_0 = arith.constant 0 : i32
    %c0_i32_1 = arith.constant 0 : i32
    return %arg0, %c0_i32, %c0_i32_0 : i32, i32, i32
  }
}

</mosaic_0001>

<bundles_post_ra>
// kernel: tpu_custom_call.1
= control target key start
LH: loop header
LB: loop body
LE: loop exit
PB: predicated region body
PF: predicated region fallthrough
CT: control target
= control target key end

     0   :  { %s1319_s0 = inlined_call_operand.hbm [shape: f32[5,512], index: 0, kind: input, shape index: {}]   ;;  %s1320_s1 = inlined_call_operand.hbm [shape: f32[4,512], index: 1, kind: input, shape index: {}]   ;;  %s1321_s2 = inlined_call_operand.hbm [shape: f32[4,512], index: 2, kind: input, shape index: {}]   ;;  %s1322_s3 = inlined_call_operand.vmem [shape: s32[1,512], index: 3, kind: input, shape index: {}]   ;;  %s1323_s4 = inlined_call_operand.hbm [shape: f32[2,8,128], index: 4, kind: output, shape index: {}]  }
   0x1   :  { %1326 = sst [smem:[#allocation18_spill]] %s1320_s1 }
   0x2   :  { %1327 = sst [smem:[#allocation19_spill]] %s1321_s2 }
   0x3   :  { %9 = vsyncpa [#allocation6], 0 }
   0x4   :  { %11 = vsyncpa [#allocation6 + $0x1], 0 }
   0x5   :  { %12 = vsyncpa [#allocation9], 0 }
   0x6   :  { %14 = vsyncpa [#allocation9 + $0x1], 0 }
   0x7   :  { %15 = vsyncpa [#allocation7], 0 }
   0x8   :  { %17 = vsyncpa [#allocation7 + $0x1], 0  ;;  %s1060_s15 = smov 0   ;;  %s1062_s16 = smov 0  }
   0x9   :  { %s1064_s17 = smov 0   ;;  %s1066_s18 = smov 0  }
   0xa   :  { %s1068_s19 = smov 0   ;;  %s1070_s20 = smov 0  }
   0xb LB: > { %1328 = sst [smem:[#allocation15_spill]] %s1024_s19  ;;  %s1091_s21 = sadd.s32 4294967295, %s1028_s20   ;;  %s1028_s20 = sphi %s1070_s20, %s23_s20   ;;  %s1024_s19 = sphi %s1068_s19, %s1344_s19   ;;  %s1020_s18 = sphi %s1066_s18, %s1343_s18   ;;  %s1016_s17 = sphi %s1064_s17, %s1347_s17   ;;  %s1012_s16 = sphi %s1062_s16, %s1346_s16   ;;  %s1008_s15 = sphi %s1060_s15, %s1345_s15  }
   0xc   : > { %s737_s22 = sadd.s32 4294967294, %s1028_s20   ;;  %s35_s23 = sadd.s32 1, %s1024_s19 }
   0xd   : > { %s44_s24 = sadd.s32 1, %s1016_s17  ;;  %p37_p0 = scmp.ge.s32.totalorder %s35_s23, 2 }
   0xe   : > { %p51_p1 = scmp.ne.s32.totalorder %s1016_s17, %s1012_s16  ;;  %p52_p2 = scmp.eq.s32.totalorder %s1028_s20, 0 }
   0xf   : > { %p57_p3 = scmp.ne.s32.totalorder %s1012_s16, %s1008_s15  ;;  %s1349_s23 = smov (%p37_p0, %s35_s23), 0 }
  0x10   : > { %1329 = sst [smem:[#allocation16_spill]] %s1349_s23  ;;  %p1103_p4 = por %p52_p2, %p51_p1 }
  0x11   : > { %p58_p5 = scmp.eq.s32.totalorder %s1091_s21, 0  ;;  %s41_s26 = ssub.s32 %s1024_s19, %s1349_s23 }
  0x12   : > { %p165_p6 = scmp.eq.s32.totalorder %s1091_s21, 1  ;;  %p42_p7 = scmp.eq.s32.totalorder %s41_s26, 0 }
  0x13   : > { %p1111_p8 = por %p58_p5, %p57_p3  ;;  %p171_p10 = scmp.eq.s32.totalorder %s737_s22, 1 }
  0x14   : > { %p1115_p9 = por %p165_p6, %p51_p1  ;;  %p797_p13 = scmp.lt.s32.totalorder %s1028_s20, 2 }
  0x15   : > { %s1120_s29 = scalar_select %p42_p7, %s1016_s17, %s44_s24  }
  0x16   : > { %p1122_p11 = por %p171_p10, %p57_p3  ;;  %s1129_s5 = sand.u32 1, %s1016_s17  }
  0x17   : > { %1333 = sst [smem:[#allocation17_spill]] %s1120_s29  ;;  %s211_s6 = sand.u32 1, %s1028_s20  }
  0x18   : > { %s743_s7 = sshll.u32 %s1129_s5, 3  ;;  %p1135_p0 = pnand %p797_p13, %p1103_p4 }
  0x19   : > { %s765_s9 = sshll.u32 %s1024_s19, 7  ;;  %s1336_s1 = sld [smem:[#allocation18_spill]] }
  0x1a   : > { %s215_s13 = scalar_lea.vmem [#allocation8], %s743_s7  ;;  %s1337_s2 = sld [smem:[#allocation19_spill]] }
  0x1b   : > { %s224_s14 = sshll.u32 %s215_s13, 4  ;;  %s1150_s25 = scalar_lea.sflag [#allocation9], %s211_s6  ;;  %s225_s14 = int_to_ptr.vmem [resolvable:$true] %s224_s14 }
  0x1c   : > { %p862_p1 = pneg %p1135_p0  ;;  %s873_s23 = scalar_lea.vmem %s225_s14, 128 }
  0x1d   : > { %p874_p2 = scmp.ne.s32.totalorder %s225_s14, %s873_s23  ;;  %s1030_s10 = smov [#allocation8]  }
  0x1e   : > { %s878_s11 = sshll.u32 %s1030_s10, 4  ;;  %s879_s11 = int_to_ptr.vmem [resolvable:$false] %s878_s11 }
  0x1f   : > { %s222_s12 = scalar_lea.hbm %s1336_s1, %s765_s9  ;;  %p876_p3 = pnand %p874_p2, %p862_p1 }
  0x20   : > { %s1148_s26 = scalar_lea.hbm %s1337_s2, %s765_s9  ;;  %s880_s13 = scalar_lea.vmem %s879_s11, 256 }
  0x21   : > { %p877_p4 = pneg %p876_p3  ;;  %p881_p5 = scmp.lt.s32.totalorder %s225_s14, %s879_s11 }
  0x22   : > { %p882_p6 = scmp.lt.s32.totalorder %s880_s13, %s873_s23 }
  0x24   : > { %p883_p7 = por %p882_p6, %p881_p5 }
  0x26   : > { %p884_p10 = pnand %p883_p7, %p877_p4 }
  0x28   : > { %887 = shalt.err (!%p884_p10)
}
  0x29   : > { %789 = dma.hbm_to_vmem [thread:$0]  (!%p1135_p0), %s222_s12, 128, %s225_s14, %s1150_s25  }
  0x2a   : > { %p749_p13 = scmp.ge.s32.totalorder %s1028_s20, 1  ;;  %p259_p2 = scmp.lt.s32.totalorder %s1028_s20, 3 }
  0x2b   : > { %s740_s23 = sshll.u32 %s1129_s5, 4  ;;  %s764_s9 = sshll.u32 %s1024_s19, 8 }
  0x2c   : > { %p1162_p3 = pnand %p749_p13, %p259_p2  ;;  %s202_s10 = scalar_lea.hbm %s1319_s0, %s764_s9 }
  0x2d   : > { %s195_s11 = scalar_lea.vmem [#allocation5], %s740_s23  ;;  %s235_s1 = scalar_lea.vmem [#allocation10], %s743_s7 }
  0x2e   : > { %s204_s13 = sshll.u32 %s195_s11, 4  ;;  %s244_s2 = sshll.u32 %s235_s1, 4  ;;  %s205_s13 = int_to_ptr.vmem [resolvable:$true] %s204_s13  ;;  %s1173_s2 = int_to_ptr.vmem [resolvable:$true] %s244_s2 }
  0x2f   : > { %s192_s12 = scalar_lea.sflag [#allocation6], %s1129_s5  ;;  %s901_s14 = scalar_lea.vmem %s205_s13, 256 }
  0x30   : > { %p902_p4 = scmp.ne.s32.totalorder %s205_s13, %s901_s14  ;;  %s1031_s19 = smov [#allocation5]  }
  0x31   : > { %s906_s29 = sshll.u32 %s1031_s19, 4  ;;  %s907_s29 = int_to_ptr.vmem [resolvable:$false] %s906_s29 }
  0x32   : > { %p904_p5 = pnand %p902_p4, %p862_p1  ;;  %s908_s22 = scalar_lea.vmem %s907_s29, 512 }
  0x33   : > { %p909_p7 = scmp.lt.s32.totalorder %s205_s13, %s907_s29  ;;  %p910_p10 = scmp.lt.s32.totalorder %s908_s22, %s901_s14 }
  0x34   : > { %p905_p6 = pneg %p904_p5 }
  0x35   : > { %p911_p13 = por %p910_p10, %p909_p7 }
  0x37   : > { %p912_p2 = pnand %p911_p13, %p905_p6 }
  0x39   : > { %915 = shalt.err (!%p912_p2)
}
  0x3a   : > { %786 = dma.hbm_to_vmem [thread:$0]  (!%p1135_p0), %s202_s10, 256, %s205_s13, %s192_s12  }
  0x3b   : > { %s929_s1 = scalar_lea.vmem %s1173_s2, 128  ;;  %s1032_s19 = smov [#allocation10]  }
  0x3c   : > { %p930_p12 = scmp.ne.s32.totalorder %s1173_s2, %s929_s1  ;;  %s934_s5 = sshll.u32 %s1032_s19, 4  ;;  %s935_s5 = int_to_ptr.vmem [resolvable:$false] %s934_s5 }
  0x3d   : > { %s936_s29 = scalar_lea.vmem %s935_s5, 256  ;;  %p937_p7 = scmp.lt.s32.totalorder %s1173_s2, %s935_s5 }
  0x3e   : > { %p932_p4 = pnand %p930_p12, %p862_p1  ;;  %p938_p6 = scmp.lt.s32.totalorder %s936_s29, %s929_s1 }
  0x40   : > { %p933_p5 = pneg %p932_p4  ;;  %p939_p10 = por %p938_p6, %p937_p7 }
  0x42   : > { %p940_p13 = pnand %p939_p10, %p933_p5 }
  0x44   : > { %943 = shalt.err (!%p940_p13)
}
  0x45   : > { %792 = dma.hbm_to_vmem [thread:$0]  (!%p1135_p0), %s1148_s26, 128, %s1173_s2, %s1150_s25  }
  0x46   : > { %263 = sbr.rel (%p1162_p3) target bundleno = 379 (0x17b), region = 36  ;;  %s1195_s7 = sand.u32 (!%p1162_p3), 1, %s1012_s16  }
  0x47   : > { %s750_s23 = sshll.u32 (!%p1162_p3), %s1195_s7, 4  ;;  %s266_s9 = scalar_lea.sflag (!%p1162_p3), [#allocation6], %s1195_s7 }
  0x48   : > { %s269_s24 = scalar_lea.vmem (!%p1162_p3), [#allocation5], %s750_s23 }
  0x4b   : > { %995 = dma.done.wait (%p1111_p8), %s266_s9, 256  }
  0x4c   : > { %997 = vsyncadd (%p1111_p8), %s266_s9, 4294967040  ;;  %s274_s2 = sand.u32 1, %s1091_s21   ;;  %s1205_s8 = sshll.u32 %s1195_s7, 3 }
  0x4d   : > { %s275_s26 = scalar_lea.sflag [#allocation9], %s274_s2  ;;  %s278_s25 = scalar_lea.vmem [#allocation8], %s1205_s8 }
  0x4e   : > { %999 = dma.done.wait (%p1111_p8), %s275_s26, 256  }
  0x4f   : > { %1001 = vsyncadd (%p1111_p8), %s275_s26, 4294967040  ;;  %s754_s6 = sshll.u32 %s1020_s18, 1  ;;  %v347_v0 = vlaneseq  ;;  %v1033_v1 = vmov 0.0   ;;  %v366_v5 = vld [vmem:[%s278_s25] sm:$0xff]  ;;  %s287_s11 = scalar_lea.vmem [#allocation10], %s1205_s8  ;;  %vm501_vm3 = vcmask 1040384  }
  0x50   : > { %p335_p12 = scmp.lt.s32.totalorder %s754_s6, 3  ;;  %345 = vst [vmem:[#allocation3] sm:$0x1f] %v1033_v1  ;;  %346 = vst [vmem:[#allocation3 + $0x8] sm:$0x1f] %v1033_v1  ;;  %v367_v6 = vld [vmem:[%s287_s11] sm:$0xff] }
  0x51   : > { %vm1216_vm0 = vcmp.lt.s32.totalorder %v347_v0, 256  ;;  %v1227_v3 = vshrl.u32 %v347_v0, 7  ;;  %v368_v7 = vsub.f32 %v366_v5, %v367_v6  ;;  %v1233_v8 = vld [vmem:[%s269_s24] sm:$0x1f]  ;;  %v1235_v9 = vld [vmem:[%s269_s24 + $0x8] sm:$0x1f] }
  0x52   : > { %s1351_s6 = smov (!%p335_p12, %s754_s6), 3  ;;  %351 = vst.msk [vmem:[#allocation4] sm:$0x3] %vm1216_vm0, %v1033_v1  ;;  %v413_v13 = vand.u32 2147483647, %v1233_v8  ;;  %vm518_vm4 = vcmask 1043456  }
  0x53   : > { %s337_s10 = scalar_lea.vmem %s1322_s3, %s1351_s6  ;;  %v1239_v11 = vsub.s32 0, %v1227_v3  ;;  %v1242_v12 = vsub.s32 1, %v1227_v3  ;;  %v369_v15 = vand.u32 2147483647, %v368_v7  ;;  %v414_v19 = vand.u32 2147483647, %v1235_v9 }
  0x54   : > { %v1229_v4 = vld [vmem:[%s337_s10] sm:$0x3]  ;;  %v415_v23 = vsub.f32 0.0, %v413_v13  ;;  %vm394_vm7 = vcmp.eq.s32.totalorder %v1227_v3, 0  ;;  %v423_v50 = vmax.f32 %v1233_v8, 0.0  ;;  %v424_v53 = vmax.f32 %v1235_v9, 0.0 }
  0x55   : > { %vm353_vm1 = vcmp.gt.s32.totalorder %v1229_v4, 0  ;;  %v371_v20 = vmul.f32 4.5, %v369_v15  ;;  %v757_v21 = vadd.f32 -0.055555556, %v369_v15  ;;  %vm370_vm2 = vcmp.lt.f32.partialorder %v369_v15, 0.11111111 }
  0x56   : > { %v755_v10 = vsel %vm353_vm1, 1.0, %v1033_v1  ;;  %v416_v24 = vsub.f32 0.0, %v414_v19  ;;  %v417_v26 = vmul.f32 1.442695, %v415_v23  ;;  %v398_v44 = vrot.slane %v1229_v4, %v1239_v11  ;;  %s761_s19 = sshll.u32 %s1020_s18, 7  ;;  %s326_s5 = scalar_lea.vmem [#allocation11], %s1205_s8 }
  0x57   : > { %v380_v17 = vrot.slane %v755_v10, %v1239_v11  ;;  %v384_v18 = vrot.slane %v755_v10, %v1242_v12  ;;  %v372_v25 = vmul.f32 %v371_v20, %v369_v15  ;;  %v402_v45 = vrot.slane %v1229_v4, %v1242_v12  ;;  %s603_s29 = sshll.u32 %s326_s5, 4  ;;  %s601_s24 = scalar_lea.hbm %s1323_s4, %s761_s19  ;;  %s604_s29 = int_to_ptr.vmem [resolvable:$true] %s603_s29 }
  0x58   : > { %v419_v27 = vmul.f32 1.442695, %v416_v24  ;;  %848 = vpow2.f32 %v417_v26  ;;  %vm403_vm5 = vcmp.eq.s32.totalorder %v1227_v3, %v398_v44  ;;  %vm437_vm8 = vcmp.ge.f32.partialorder %v1233_v8, 0.0  ;;  %s590_s2 = scalar_lea.sflag [#allocation7], %s1195_s7  ;;  %s944_s26 = scalar_lea.vmem %s604_s29, 128 }
  0x59   : > { %v359_v14 = vld [vmem:[#allocation4] sm:$0x3]  ;;  %v385_v22 = vcombine.low %v380_v17, %v384_v18  ;;  %v374_v28 = vsel %vm370_vm2, %v372_v25, %v757_v21  ;;  %vm404_vm6 = vcmp.eq.s32.totalorder %v1227_v3, %v402_v45  ;;  %v758_v46 = vsel %vm403_vm5, 1.0, %v1033_v1  ;;  %p945_p8 = scmp.ne.s32.totalorder %s604_s29, %s944_s26  ;;  %s1034_s25 = smov [#allocation11]  }
  0x5a   : > { %v360_v16 = vadd.f32 %v755_v10, %v359_v14  ;;  %850 = vpow2.f32 %v419_v27  ;;  %v759_v47 = vsel %vm404_vm6, 1.0, %v1033_v1  ;;  %v411_v48 = vsel %vm394_vm7, %v380_v17, %v758_v46  ;;  %s948_s6 = sshll.u32 %s1034_s25, 4  ;;  %s949_s6 = int_to_ptr.vmem [resolvable:$false] %s948_s6 }
  0x5b   : > { %v387_v29 = vmul.f32 %v385_v22, %v374_v28  ;;  %v412_v49 = vsel %vm394_vm7, %v384_v18, %v759_v47  ;;  %v425_v51 = vmul.f32 %v411_v48, %v1233_v8  ;;  %vm438_vm9 = vcmp.ge.f32.partialorder %v1235_v9, 0.0  ;;  %p946_p0 = pnand %p945_p8, %p1115_p9  ;;  %s950_s18 = scalar_lea.vmem %s949_s6, 256 }
  0x5c   : > { %365 = vst.msk [vmem:[#allocation4] sm:$0x3] %vm1216_vm0, %v360_v16  ;;  %v426_v54 = vmul.f32 %v412_v49, %v1235_v9  ;;  %v445_v57 = vsub.f32 1.0, %v411_v48  ;;  %v443_v61 = vmul.f32 0.25, %v411_v48  ;;  %v446_v62 = vsub.f32 1.0, %v412_v49  ;;  %p951_p3 = scmp.lt.s32.totalorder %s604_s29, %s949_s6  ;;  %p952_p2 = scmp.lt.s32.totalorder %s950_s18, %s944_s26 }
  0x5d   : > { %v516_v30 = vcombine.high %v387_v29, %v387_v29  ;;  %v519_v36 = vsel %vm518_vm4, %v387_v29, 0.0  ;;  %v427_v59 = vsub.f32 %v423_v50, %v425_v51  ;;  %v444_v10 = vmul.f32 0.25, %v412_v49  ;;  %p947_p1 = pneg %p946_p0 }
  0x5e   : > { %v428_v63 = vsub.f32 %v424_v53, %v426_v54  ;;  %v447_v5 = vmul.f32 0.75, %v445_v57  ;;  %v448_v13 = vmul.f32 0.75, %v446_v62  ;;  %vm356_vm10 = vcmp.gt.s32.totalorder %v1229_v4, 4294967295  ;;  %p953_p4 = por %p952_p2, %p951_p3 }
  0x5f   : > { %v520_v37 = vsel %vm518_vm4, %v516_v30, 0.0  ;;  %v756_v24 = vsel %vm356_vm10, 1.0, %v1033_v1  ;;  %vm557_vm11 = vcmask 1044480  }
  0x60   : > { %v521_v39 = vadd.f32 %v520_v37, %v519_v36  ;;  %v449_v18 = vadd.f32 %v447_v5, %v443_v61  ;;  %v450_v21 = vadd.f32 %v448_v13, %v444_v10  ;;  %v477_v4 = vrot.slane %v756_v24, %v1242_v12  ;;  %v464_v37 = vld [vmem:[#allocation3 + $0x8] sm:$0x1f]  ;;  %p954_p5 = pnand %p953_p4, %p947_p1 }
  0x63   : > { %v489_v31 = vld [vmem:[#allocation4] sm:$0x3] }
  0x64   : > { %v494_v32 = vrot.slane %v489_v31, %v1239_v11  ;;  %v498_v33 = vrot.slane %v489_v31, %v1242_v12  ;;  %v473_v31 = vrot.slane %v756_v24, %v1239_v11 }
  0x65   : > { %v849_v40 = vpop.eup %848 }
  0x66   : > { %v502_v34 = vsel %vm501_vm3, %v494_v32, 0.0  ;;  %v503_v35 = vsel %vm501_vm3, %v498_v33, 0.0  ;;  %v421_v42 = vadd.f32 1.0, %v849_v40 }
  0x67   : > { %v504_v38 = vadd.f32 %v503_v35, %v502_v34  ;;  %v851_v41 = vpop.eup %850  ;;  %v463_v35 = vld [vmem:[#allocation3] sm:$0x1f] }
  0x68   : > { %v422_v43 = vadd.f32 1.0, %v851_v41  ;;  %852 = vlog2.f32 %v421_v42 }
  0x69   : > { %505 = vadd.xlane.f32.xlu0 %v504_v38 }
  0x6a   : > { %854 = vlog2.f32 %v422_v43 }
  0x6b   : > { %856 = vrcp.f32 %v421_v42 }
  0x6c   : > { %858 = vrcp.f32 %v422_v43 }
  0x6d   : > { %522 = vadd.xlane.f32.xlu0 %v521_v39 }
  0x75   : > { %v853_v52 = vpop.eup %852 }
  0x76   : > { %v430_v2 = vmul.f32 0.6931472, %v853_v52 }
  0x77   : > { %v855_v55 = vpop.eup %854 }
  0x78   : > { %v857_v56 = vpop.eup %856  ;;  %v432_v6 = vmul.f32 0.6931472, %v855_v55  ;;  %v433_v9 = vadd.f32 %v430_v2, %v427_v59 }
  0x79   : > { %v859_v58 = vpop.eup %858  ;;  %v439_v60 = vmul.f32 %v857_v56, %v849_v40 }
  0x7a   : > { %v440_v3 = vmul.f32 %v859_v58, %v851_v41  ;;  %v434_v20 = vadd.f32 %v432_v6, %v428_v63  ;;  %v465_v27 = vmul.f32 %v449_v18, %v433_v9  ;;  %v572_v18 = vand.u32 127, %v347_v0 }
  0x7b   : > { %v441_v7 = vsel %vm437_vm8, %v857_v56, %v439_v60 }
  0x7c   : > { %v442_v14 = vsel %vm438_vm9, %v859_v58, %v440_v3  ;;  %v451_v15 = vmul.f32 %v441_v7, %v411_v48  ;;  %v453_v16 = vsub.f32 1.0, %v441_v7  ;;  %v466_v29 = vmul.f32 %v450_v21, %v434_v20 }
  0x7d   : > { %v452_v8 = vmul.f32 %v442_v14, %v412_v49  ;;  %v454_v17 = vsub.f32 1.0, %v442_v14  ;;  %vm573_vm12 = vcmp.eq.s32.totalorder %v572_v18, 0  ;;  %vm576_vm13 = vcmp.eq.s32.totalorder %v572_v18, 1 }
  0x7e   : > { %v455_v19 = vmul.f32 %v453_v16, %v445_v57  ;;  %vm580_vm14 = vcmp.eq.s32.totalorder %v572_v18, 2  ;;  %vm584_vm15 = vcmp.eq.s32.totalorder %v572_v18, 3 }
  0x7f   : > { %v456_v22 = vmul.f32 %v454_v17, %v446_v62 }
  0x80   : > { %v457_v23 = vadd.f32 %v455_v19, %v451_v15 }
  0x81   : > { %v458_v25 = vadd.f32 %v456_v22, %v452_v8 }
  0x82   : > { %v459_v26 = vsub.f32 1.0, %v457_v23 }
  0x83   : > { %v460_v28 = vsub.f32 1.0, %v458_v25 }
  0x84   : > { %v461_v30 = vmul.f32 %v459_v26, %v459_v26 }
  0x85   : > { %v462_v32 = vmul.f32 %v460_v28, %v460_v28 }
  0x86   : > { %v467_v33 = vmul.f32 %v465_v27, %v461_v30 }
  0x87   : > { %v468_v34 = vmul.f32 %v466_v29, %v462_v32 }
  0x88   : > { %v480_v36 = vmul.f32 %v473_v31, %v467_v33 }
  0x89   : > { %v481_v38 = vmul.f32 %v477_v4, %v468_v34 }
  0x8a   : > { %v482_v39 = vadd.f32 %v480_v36, %v463_v35 }
  0x8b   : > { %v483_v40 = vadd.f32 %v481_v38, %v464_v37 }
  0x8c   : > { %484 = vst [vmem:[#allocation3] sm:$0x1f] %v482_v39 }
  0x8d   : > { %485 = vst [vmem:[#allocation3 + $0x8] sm:$0x1f] %v483_v40 }
  0x93   : > { %v555_v1 = vld [vmem:[#allocation3] sm:$0x1f] }
  0x94   : > { %v531_v41 = vld [vmem:[#allocation3] ss:$8 sm:$0x3]  ;;  %v558_v47 = vsel %vm557_vm11, %v555_v1, 0.0 }
  0x95   : > { %v556_v42 = vld [vmem:[#allocation3 + $0x8] sm:$0x1f]  ;;  %v536_v43 = vrot.slane %v531_v41, %v1239_v11  ;;  %v540_v44 = vrot.slane %v531_v41, %v1242_v12 }
  0x96   : > { %v559_v48 = vsel %vm557_vm11, %v556_v42, 0.0 }
  0x97   : > { %v543_v45 = vsel %vm501_vm3, %v536_v43, 0.0  ;;  %v544_v46 = vsel %vm501_vm3, %v540_v44, 0.0  ;;  %v560_v50 = vadd.f32 %v559_v48, %v558_v47 }
  0x98   : > { %v545_v49 = vadd.f32 %v544_v46, %v543_v45 }
  0x9a   : > { %546 = vadd.xlane.f32.xlu1 %v545_v49 }
  0x9e   : > { %561 = vadd.xlane.f32.xlu1 %v560_v50 }
  0xf2   : > { %v506_v51 = vpop.xlane.xlu0 %505 }
  0xf3   : > { %v507_v52 = vrot.slane %v506_v51, 4 }
  0xf5   : > { %v508_v53 = vadd.f32 %v507_v52, %v506_v51 }
  0xf6   : > { %v523_v54 = vpop.xlane.xlu0 %522 }
  0xf7   : > { %v509_v55 = vrot.slane %v508_v53, 2  ;;  %v524_v56 = vrot.slane %v523_v54, 4 }
  0xf9   : > { %v525_v57 = vadd.f32 %v524_v56, %v523_v54  ;;  %v510_v11 = vadd.f32 %v509_v55, %v508_v53 }
  0xfb   : > { %v526_v58 = vrot.slane %v525_v57, 2  ;;  %v511_v12 = vrot.slane %v510_v11, 1 }
  0xfd   : > { %v527_v59 = vadd.f32 %v526_v58, %v525_v57  ;;  %v512_v60 = vadd.f32 %v511_v12, %v510_v11 }
  0xff   : > { %767 = vpush %v512_v60  ;;  %v528_v61 = vrot.slane %v527_v59, 1 }
 0x101   : > { %v529_v62 = vadd.f32 %v528_v61, %v527_v59 }
 0x103   : > { %769 = vpush %v529_v62 }
 0x123   : > { %v547_v63 = vpop.xlane.xlu1 %546 }
 0x124   : > { %v548_v2 = vrot.slane %v547_v63, 4 }
 0x126   : > { %v549_v3 = vadd.f32 %v548_v2, %v547_v63 }
 0x127   : > { %v562_v5 = vpop.xlane.xlu1 %561 }
 0x128   : > { %v550_v6 = vrot.slane %v549_v3, 2  ;;  %v563_v7 = vrot.slane %v562_v5, 4 }
 0x12a   : > { %v564_v10 = vadd.f32 %v563_v7, %v562_v5  ;;  %v551_v13 = vadd.f32 %v550_v6, %v549_v3 }
 0x12c   : > { %v565_v14 = vrot.slane %v564_v10, 2  ;;  %v552_v15 = vrot.slane %v551_v13, 1 }
 0x12e   : > { %v566_v16 = vadd.f32 %v565_v14, %v564_v10  ;;  %v553_v8 = vadd.f32 %v552_v15, %v551_v13 }
 0x130   : > { %771 = vpush %v553_v8  ;;  %v567_v17 = vrot.slane %v566_v16, 1  ;;  %s768_s13 = spop %767 }
 0x131   : > { %v574_v19 = vstv %s768_s13 }
 0x132   : > { %v568_v9 = vadd.f32 %v567_v17, %v566_v16  ;;  %v575_v21 = vsel %vm573_vm12, %v574_v19, 0.0 }
 0x134   : > { %773 = vpush %v568_v9  ;;  %s770_s12 = spop %769 }
 0x135   : > { %v577_v20 = vstv %s770_s12 }
 0x136   : > { %v578_v22 = vsel %vm576_vm13, %v577_v20, 0.0 }
 0x137   : > { %v579_v23 = vadd.f32 %v578_v22, %v575_v21 }
 0x161   : > { %s772_s14 = spop %771 }
 0x162   : > { %v585_v24 = vstv %s772_s14 }
 0x163   : > { %v586_v27 = vsel %vm584_vm15, %v585_v24, 0.0 }
 0x165   : > { %s774_s22 = spop %773 }
 0x166   : > { %s570_s1 = ssub.f32 %s774_s22, %s772_s14 }
 0x168   : > { %v581_v25 = vstv %s570_s1 }
 0x169   : > { %v582_v0 = vsel %vm580_vm14, %v581_v25, 0.0 }
 0x16a   : > { %v583_v26 = vadd.f32 %v582_v0, %v579_v23 }
 0x16c   : > { %v587_v28 = vadd.f32 %v586_v27, %v583_v26 }
 0x16e   : > { %588 = vst [vmem:[%s326_s5] sm:$0xff] %v587_v28 }
 0x16f   : > { %957 = shalt.err (!%p954_p5)
}
 0x170   : > { %s958_s8 = scalar_lea.hbm %s601_s24, 128  ;;  %s962_s27 = scalar_lea.hbm %s1323_s4, 256 }
 0x171   : > { %p959_p7 = scmp.ne.s32.totalorder %s601_s24, %s958_s8  ;;  %p963_p13 = scmp.lt.s32.totalorder %s601_s24, %s1323_s4 }
 0x172   : > { %p964_p12 = scmp.lt.s32.totalorder %s962_s27, %s958_s8 }
 0x173   : > { %p960_p6 = pnand %p959_p7, %p1115_p9 }
 0x174   : > { %p965_p8 = por %p964_p12, %p963_p13 }
 0x175   : > { %p961_p10 = pneg %p960_p6 }
 0x177   : > { %p966_p0 = pnand %p965_p8, %p961_p10 }
 0x179   : > { %969 = shalt.err (!%p966_p0)
}
 0x17a   : > { %781 = dma.vmem_to_hbm [thread:$0]  (%p1115_p9), %s604_s29, 128, %s601_s24, %s590_s2  }
 0x17b PF: > { %s615_s13 = sand.u32 1, %s1008_s15   ;;  %p1341_p1 = scmp.ge.s32.totalorder %s1028_s20, 2 }
 0x17c   : > { %s616_s12 = scalar_lea.sflag [#allocation7], %s615_s13 }
 0x17d   : > { %p794_p3 = pnand %p1341_p1, %p1122_p11 }
 0x17f   : > { %p795_p2 = pneg %p794_p3 }
 0x181   : > { %1003 = dma.done.wait (%p795_p2), %s616_s12, 128  }
 0x182   : > { %1005 = vsyncadd (%p795_p2), %s616_s12, 4294967168  ;;  %s23_s20 = sadd.s32 1, %s1028_s20   ;;  %s1342_s14 = sld [smem:[#allocation17_spill]] }
 0x183   : > { %p20_p4 = scmp.ge.s32.totalorder %s23_s20, 4   ;;  %s1343_s18 = sld [smem:[#allocation15_spill]] }
 0x184   : > { %s1344_s19 = sld [smem:[#allocation16_spill]]  ;;  %s1345_s15 = smov %s1012_s16 }
 0x185   : > { %s1346_s16 = smov %s1016_s17  ;;  %22 = sbr.rel (!%p20_p4) target bundleno = 11 (0xb), region = 116 }
 0x188   : > { %s1347_s17 = smov %s1342_s14 }
 0x18a   :  { %621 = vsyncpa [#allocation6], 1 }
 0x18b   :  { %623 = vsyncpa [#allocation6 + $0x1], 1 }
 0x18c   :  { %624 = vsyncpa [#allocation9], 1 }
 0x18d   :  { %626 = vsyncpa [#allocation9 + $0x1], 1 }
 0x18e   :  { %627 = vsyncpa [#allocation7], 1 }
 0x18f   :  { %629 = vsyncpa [#allocation7 + $0x1], 1 }

</bundles_post_ra>
